<compile_context>
chip_gen: v7x
topology: tpu7x:2x2x1
jax: 0.10.0
libtpu: 0.0.40
codegen_flags: <defaults>
</compile_context>

<pallas_src>
import functools

import numpy as np
import jax
import jax.numpy as jnp
from jax import lax
from jax.experimental import pallas as pl
from jax.experimental.pallas import tpu as pltpu


def _lrn_kernel(x_ref, o_ref, s1_ref, s2_ref, *, C, H, W, cw, ss, alpha, beta):
    # x_ref: (1, C, H*W) input block (lane-dense last dim)
    # s1_ref, s2_ref: (C, H*W) fp32 VMEM scratch accumulators
    HW = H * W
    cp = (cw - 1) // 2
    sp = (ss - 1) // 2

    xf = x_ref[0].astype(jnp.float32)          # cast once per block, reused
    sq = xf * xf

    # ---- stage 1: channel box-sum (zero-padded) -> s1_ref -------------------
    s1_ref[...] = sq
    for d in range(1, cp + 1):
        if d >= C:
            continue                            # fully out of range -> zero
        s1_ref[:C - d, :] += sq[d:, :]          # out[c] += sq[c + d]
        s1_ref[d:, :] += sq[:C - d, :]          # out[c] += sq[c - d]

    # ---- stage 2: H box-sum = lane shifts by multiples of W -> s2_ref -------
    # A shift of d rows is a flat shift of d*W; it never mixes columns across
    # rows, and flat out-of-range exactly corresponds to row out-of-range.
    s2_ref[...] = s1_ref[...]
    for d in range(1, sp + 1):
        off = d * W
        if off >= HW:
            continue
        s2_ref[:, :HW - off] += s1_ref[:, off:]     # out[h] += in[h + d]
        s2_ref[:, off:] += s1_ref[:, :HW - off]     # out[h] += in[h - d]

    # ---- stage 3: W box-sum = lane shifts + row-boundary mask -> s1_ref -----
    if sp > 0:
        col = lax.broadcasted_iota(jnp.int32, (C, HW), 1) % W
    s1_ref[...] = s2_ref[...]
    for d in range(1, sp + 1):
        if d >= W:
            continue                            # whole shift crosses the row
        # source at column w contributes to column (w - d) iff w >= d
        s1_ref[:, :HW - d] += jnp.where(col[:, d:] >= d, s2_ref[:, d:], 0.0)
        # source at column w contributes to column (w + d) iff w < W - d
        s1_ref[:, d:] += jnp.where(col[:, :HW - d] < W - d,
                                   s2_ref[:, :HW - d], 0.0)

    # ---- epilogue: out = x * (1 + (alpha/count) * acc) ** (-beta) ------------
    # count_include_pad=True -> divide by the full window size.
    scale = float(alpha) / float(cw * ss * ss)
    t = 1.0 + scale * s1_ref[...]
    # NOTE: assumes alpha >= 0 so t >= 1 (same implicit assumption as PyTorch).
    if beta == 0.75:
        inv = lax.rsqrt(t) * lax.rsqrt(jnp.sqrt(t))   # t ** -0.75, no divide
        out = xf * inv
    elif beta == 0.5:
        out = xf * lax.rsqrt(t)
    else:
        out = xf * jnp.power(t, -float(beta))
    o_ref[0] = out.astype(o_ref.dtype)


def lrn_pallas(x, *, channel_size=1, spatial_size=1, alpha=1.0, beta=0.75,
               across_channel_spatial=True):
    N, C, H, W = x.shape
    cw = channel_size if across_channel_spatial else 1
    # The PyTorch module only preserves shape for odd window sizes.
    assert spatial_size % 2 == 1, "spatial_size must be odd"
    assert cw % 2 == 1, "channel_size must be odd"

    HW = H * W
    x2 = x.reshape(N, C, HW)   # free (metadata-only) reshape -> lane-dense

    kernel = functools.partial(
        _lrn_kernel, C=C, H=H, W=W, cw=cw, ss=spatial_size,
        alpha=float(alpha), beta=float(beta))

    # Rough per-step VMEM footprint: double-buffered in/out + 2 scratch + temps.
    slab_io = C * HW * x.dtype.itemsize
    slab_f32 = C * HW * 4
    est = 4 * slab_io + 6 * slab_f32
    vmem_limit = int(min(100 * 2**20, max(32 * 2**20, 2 * est)))

    out2 = pl.pallas_call(
        kernel,
        out_shape=jax.ShapeDtypeStruct((N, C, HW), x.dtype),
        grid_spec=pltpu.PrefetchScalarGridSpec(
            num_scalar_prefetch=0,
            grid=(N,),
            in_specs=[pl.BlockSpec((1, C, HW), lambda n: (n, 0, 0))],
            out_specs=pl.BlockSpec((1, C, HW), lambda n: (n, 0, 0)),
            scratch_shapes=[pltpu.VMEM((C, HW), jnp.float32),
                            pltpu.VMEM((C, HW), jnp.float32)]),
        compiler_params=pltpu.CompilerParams(
            dimension_semantics=("parallel",),
            vmem_limit_bytes=vmem_limit),
    )(x2)
    return out2.reshape(N, C, H, W)


def lrn_ref(x, *, channel_size=1, spatial_size=1, alpha=1.0, beta=0.75,
            across_channel_spatial=True):
    # Independent pure-JAX reference (matches PyTorch AvgPool with
    # count_include_pad=True).
    sp = int((spatial_size - 1.0) / 2)
    cp = int((channel_size - 1.0) / 2) if across_channel_spatial else 0
    cw = channel_size if across_channel_spatial else 1
    sq = x.astype(jnp.float32) ** 2
    pooled = lax.reduce_window(
        sq, 0.0, lax.add,
        window_dimensions=(1, cw, spatial_size, spatial_size),
        window_strides=(1, 1, 1, 1),
        padding=((0, 0), (cp, cp), (sp, sp), (sp, sp)))
    div = (1.0 + alpha * pooled / float(cw * spatial_size * spatial_size)) ** beta
    return (x.astype(jnp.float32) / div).astype(x.dtype)


if __name__ == "__main__":
    key = jax.random.PRNGKey(0)
    x = jax.random.normal(key, (2, 8, 16, 16), dtype=jnp.float32)

    # Case 1: across_channel_spatial=True (AvgPool3d path), beta=0.75 rsqrt path
    cfg1 = dict(channel_size=5, spatial_size=3, alpha=1.0, beta=0.75,
                across_channel_spatial=True)
    out1 = jax.block_until_ready(lrn_pallas(x, **cfg1))
    ref1 = jax.block_until_ready(lrn_ref(x, **cfg1))
    np.testing.assert_allclose(np.asarray(out1), np.asarray(ref1),
                               rtol=1e-5, atol=1e-5)

    # Case 2: across_channel_spatial=False (per-channel AvgPool2d path)
    cfg2 = dict(channel_size=1, spatial_size=3, alpha=1.0, beta=0.75,
                across_channel_spatial=False)
    out2 = jax.block_until_ready(lrn_pallas(x, **cfg2))
    ref2 = jax.block_until_ready(lrn_ref(x, **cfg2))
    np.testing.assert_allclose(np.asarray(out2), np.asarray(ref2),
                               rtol=1e-5, atol=1e-5)

    # Case 3: degenerate 1x1x1 window + generic beta (power fallback path)
    cfg3 = dict(channel_size=1, spatial_size=1, alpha=2.0, beta=0.7,
                across_channel_spatial=True)
    out3 = jax.block_until_ready(lrn_pallas(x, **cfg3))
    ref3 = jax.block_until_ready(lrn_ref(x, **cfg3))
    np.testing.assert_allclose(np.asarray(out3), np.asarray(ref3),
                               rtol=1e-5, atol=1e-5)

    print("KERNEL_OK")
</pallas_src>

<mosaic_0001>
module attributes {stable_mosaic.version = 11 : i64} {
  func.func @_lrn_kernel(%arg0: i32, %arg1: memref<1x8x256xf32, #tpu.memory_space<vmem>>, %arg2: memref<1x8x256xf32, #tpu.memory_space<vmem>>, %arg3: memref<8x256xf32, #tpu.memory_space<vmem>>, %arg4: memref<8x256xf32, #tpu.memory_space<vmem>>) attributes {dimension_semantics = [#tpu.dimension_semantics<parallel>], iteration_bounds = array<i64: 2>, scalar_prefetch = 0 : i64, scratch_operands = 2 : i64, tpu.core_type = #tpu.core_type<tc>, window_params = [{transform_indices = @transform_0, window_bounds = array<i64: 1, 8, 256>}, {transform_indices = @transform_1, window_bounds = array<i64: 1, 8, 256>}]} {
    %c0 = arith.constant 0 : index
    %c0_0 = arith.constant 0 : index
    %c0_1 = arith.constant 0 : index
    %0 = vector.load %arg1[%c0, %c0_0, %c0_1] : memref<1x8x256xf32, #tpu.memory_space<vmem>>, vector<1x8x256xf32>
    %1 = vector.shape_cast %0 : vector<1x8x256xf32> to vector<8x256xf32>
    %2 = arith.mulf %1, %1 : vector<8x256xf32>
    %c0_2 = arith.constant 0 : index
    %c0_3 = arith.constant 0 : index
    %3 = vector.load %arg3[%c0_2, %c0_3] : memref<8x256xf32, #tpu.memory_space<vmem>>, vector<8x256xf32>
    tpu.vector_store %arg3[%c0_2, %c0_3], %2 {strides = array<i32>} : memref<8x256xf32, #tpu.memory_space<vmem>>, vector<8x256xf32>,
    %c0_4 = arith.constant 0 : index
    %c0_5 = arith.constant 0 : index
    %4 = vector.load %arg3[%c0_4, %c0_5] : memref<8x256xf32, #tpu.memory_space<vmem>>, vector<7x256xf32>
    %5 = vector.extract_strided_slice %2 {offsets = [1, 0], sizes = [7, 256], strides = [1, 1]} : vector<8x256xf32> to vector<7x256xf32>
    %6 = arith.addf %4, %5 : vector<7x256xf32>
    %c0_6 = arith.constant 0 : index
    %c0_7 = arith.constant 0 : index
    %7 = vector.load %arg3[%c0_6, %c0_7] : memref<8x256xf32, #tpu.memory_space<vmem>>, vector<7x256xf32>
    tpu.vector_store %arg3[%c0_6, %c0_7], %6 {strides = array<i32>} : memref<8x256xf32, #tpu.memory_space<vmem>>, vector<7x256xf32>,
    %c1 = arith.constant 1 : index
    %c0_8 = arith.constant 0 : index
    %8 = vector.load %arg3[%c1, %c0_8] : memref<8x256xf32, #tpu.memory_space<vmem>>, vector<7x256xf32>
    %9 = vector.extract_strided_slice %2 {offsets = [0, 0], sizes = [7, 256], strides = [1, 1]} : vector<8x256xf32> to vector<7x256xf32>
    %10 = arith.addf %8, %9 : vector<7x256xf32>
    %c1_9 = arith.constant 1 : index
    %c0_10 = arith.constant 0 : index
    %11 = vector.load %arg3[%c1_9, %c0_10] : memref<8x256xf32, #tpu.memory_space<vmem>>, vector<7x256xf32>
    tpu.vector_store %arg3[%c1_9, %c0_10], %10 {strides = array<i32>} : memref<8x256xf32, #tpu.memory_space<vmem>>, vector<7x256xf32>,
    %c0_11 = arith.constant 0 : index
    %c0_12 = arith.constant 0 : index
    %12 = vector.load %arg3[%c0_11, %c0_12] : memref<8x256xf32, #tpu.memory_space<vmem>>, vector<6x256xf32>
    %13 = vector.extract_strided_slice %2 {offsets = [2, 0], sizes = [6, 256], strides = [1, 1]} : vector<8x256xf32> to vector<6x256xf32>
    %14 = arith.addf %12, %13 : vector<6x256xf32>
    %c0_13 = arith.constant 0 : index
    %c0_14 = arith.constant 0 : index
    %15 = vector.load %arg3[%c0_13, %c0_14] : memref<8x256xf32, #tpu.memory_space<vmem>>, vector<6x256xf32>
    tpu.vector_store %arg3[%c0_13, %c0_14], %14 {strides = array<i32>} : memref<8x256xf32, #tpu.memory_space<vmem>>, vector<6x256xf32>,
    %c2 = arith.constant 2 : index
    %c0_15 = arith.constant 0 : index
    %16 = vector.load %arg3[%c2, %c0_15] : memref<8x256xf32, #tpu.memory_space<vmem>>, vector<6x256xf32>
    %17 = vector.extract_strided_slice %2 {offsets = [0, 0], sizes = [6, 256], strides = [1, 1]} : vector<8x256xf32> to vector<6x256xf32>
    %18 = arith.addf %16, %17 : vector<6x256xf32>
    %c2_16 = arith.constant 2 : index
    %c0_17 = arith.constant 0 : index
    %19 = vector.load %arg3[%c2_16, %c0_17] : memref<8x256xf32, #tpu.memory_space<vmem>>, vector<6x256xf32>
    tpu.vector_store %arg3[%c2_16, %c0_17], %18 {strides = array<i32>} : memref<8x256xf32, #tpu.memory_space<vmem>>, vector<6x256xf32>,
    %c0_18 = arith.constant 0 : index
    %c0_19 = arith.constant 0 : index
    %20 = vector.load %arg3[%c0_18, %c0_19] : memref<8x256xf32, #tpu.memory_space<vmem>>, vector<8x256xf32>
    %c0_20 = arith.constant 0 : index
    %c0_21 = arith.constant 0 : index
    %21 = vector.load %arg4[%c0_20, %c0_21] : memref<8x256xf32, #tpu.memory_space<vmem>>, vector<8x256xf32>
    tpu.vector_store %arg4[%c0_20, %c0_21], %20 {strides = array<i32>} : memref<8x256xf32, #tpu.memory_space<vmem>>, vector<8x256xf32>,
    %c0_22 = arith.constant 0 : index
    %c0_23 = arith.constant 0 : index
    %22 = vector.load %arg4[%c0_22, %c0_23] : memref<8x256xf32, #tpu.memory_space<vmem>>, vector<8x240xf32>
    %c0_24 = arith.constant 0 : index
    %c16 = arith.constant 16 : index
    %23 = vector.load %arg3[%c0_24, %c16] : memref<8x256xf32, #tpu.memory_space<vmem>>, vector<8x240xf32>
    %24 = arith.addf %22, %23 : vector<8x240xf32>
    %c0_25 = arith.constant 0 : index
    %c0_26 = arith.constant 0 : index
    %25 = vector.load %arg4[%c0_25, %c0_26] : memref<8x256xf32, #tpu.memory_space<vmem>>, vector<8x240xf32>
    tpu.vector_store %arg4[%c0_25, %c0_26], %24 {strides = array<i32>} : memref<8x256xf32, #tpu.memory_space<vmem>>, vector<8x240xf32>,
    %c0_27 = arith.constant 0 : index
    %c16_28 = arith.constant 16 : index
    %26 = vector.load %arg4[%c0_27, %c16_28] : memref<8x256xf32, #tpu.memory_space<vmem>>, vector<8x240xf32>
    %c0_29 = arith.constant 0 : index
    %c0_30 = arith.constant 0 : index
    %27 = vector.load %arg3[%c0_29, %c0_30] : memref<8x256xf32, #tpu.memory_space<vmem>>, vector<8x240xf32>
    %28 = arith.addf %26, %27 : vector<8x240xf32>
    %c0_31 = arith.constant 0 : index
    %c16_32 = arith.constant 16 : index
    %29 = vector.load %arg4[%c0_31, %c16_32] : memref<8x256xf32, #tpu.memory_space<vmem>>, vector<8x240xf32>
    tpu.vector_store %arg4[%c0_31, %c16_32], %28 {strides = array<i32>} : memref<8x256xf32, #tpu.memory_space<vmem>>, vector<8x240xf32>,
    %30 = tpu.iota {dimensions = array<i32: 1>} : vector<8x256xi32>
    %c16_i32 = arith.constant 16 : i32
    %c0_i32 = arith.constant 0 : i32
    %31 = arith.cmpi eq, %c16_i32, %c0_i32 : i32
    %c1_i32 = arith.constant 1 : i32
    %32 = arith.select %31, %c1_i32, %c16_i32 : i32
    %33 = vector.broadcast %32 : i32 to vector<8x256xi32>
    %34 = arith.remsi %30, %33 : vector<8x256xi32>
    %c0_i32_33 = arith.constant 0 : i32
    %35 = vector.broadcast %c0_i32_33 : i32 to vector<8x256xi32>
    %36 = arith.cmpi ne, %34, %35 : vector<8x256xi32>
    %c0_i32_34 = arith.constant 0 : i32
    %37 = vector.broadcast %c0_i32_34 : i32 to vector<8x256xi32>
    %38 = arith.cmpi slt, %34, %37 : vector<8x256xi32>
    %c0_i32_35 = arith.constant 0 : i32
    %39 = arith.cmpi slt, %32, %c0_i32_35 : i32
    %40 = vector.broadcast %39 : i1 to vector<8x256xi1>
    %41 = vector.broadcast %40 : vector<8x256xi1> to vector<8x256xi1>
    %42 = arith.xori %38, %41 : vector<8x256xi1>
    %43 = arith.andi %42, %36 : vector<8x256xi1>
    %44 = vector.broadcast %32 : i32 to vector<8x256xi32>
    %45 = arith.addi %34, %44 : vector<8x256xi32>
    %46 = arith.select %43, %45, %34 : vector<8x256xi1>, vector<8x256xi32>
    %c0_36 = arith.constant 0 : index
    %c0_37 = arith.constant 0 : index
    %47 = vector.load %arg4[%c0_36, %c0_37] : memref<8x256xf32, #tpu.memory_space<vmem>>, vector<8x256xf32>
    %c0_38 = arith.constant 0 : index
    %c0_39 = arith.constant 0 : index
    %48 = vector.load %arg3[%c0_38, %c0_39] : memref<8x256xf32, #tpu.memory_space<vmem>>, vector<8x256xf32>
    tpu.vector_store %arg3[%c0_38, %c0_39], %47 {strides = array<i32>} : memref<8x256xf32, #tpu.memory_space<vmem>>, vector<8x256xf32>,
    %c0_40 = arith.constant 0 : index
    %c0_41 = arith.constant 0 : index
    %49 = vector.load %arg3[%c0_40, %c0_41] : memref<8x256xf32, #tpu.memory_space<vmem>>, vector<8x255xf32>
    %50 = vector.extract_strided_slice %46 {offsets = [0, 1], sizes = [8, 255], strides = [1, 1]} : vector<8x256xi32> to vector<8x255xi32>
    %c1_i32_42 = arith.constant 1 : i32
    %51 = vector.broadcast %c1_i32_42 : i32 to vector<8x255xi32>
    %52 = arith.cmpi sge, %50, %51 : vector<8x255xi32>
    %c0_43 = arith.constant 0 : index
    %c1_44 = arith.constant 1 : index
    %53 = vector.load %arg4[%c0_43, %c1_44] : memref<8x256xf32, #tpu.memory_space<vmem>>, vector<8x255xf32>
    %cst = arith.constant 0.000000e+00 : f32
    %54 = vector.broadcast %cst : f32 to vector<8x255xf32>
    %55 = arith.select %52, %53, %54 : vector<8x255xi1>, vector<8x255xf32>
    %56 = arith.addf %49, %55 : vector<8x255xf32>
    %c0_45 = arith.constant 0 : index
    %c0_46 = arith.constant 0 : index
    %57 = vector.load %arg3[%c0_45, %c0_46] : memref<8x256xf32, #tpu.memory_space<vmem>>, vector<8x255xf32>
    tpu.vector_store %arg3[%c0_45, %c0_46], %56 {strides = array<i32>} : memref<8x256xf32, #tpu.memory_space<vmem>>, vector<8x255xf32>,
    %c0_47 = arith.constant 0 : index
    %c1_48 = arith.constant 1 : index
    %58 = vector.load %arg3[%c0_47, %c1_48] : memref<8x256xf32, #tpu.memory_space<vmem>>, vector<8x255xf32>
    %59 = vector.extract_strided_slice %46 {offsets = [0, 0], sizes = [8, 255], strides = [1, 1]} : vector<8x256xi32> to vector<8x255xi32>
    %c15_i32 = arith.constant 15 : i32
    %60 = vector.broadcast %c15_i32 : i32 to vector<8x255xi32>
    %61 = arith.cmpi slt, %59, %60 : vector<8x255xi32>
    %c0_49 = arith.constant 0 : index
    %c0_50 = arith.constant 0 : index
    %62 = vector.load %arg4[%c0_49, %c0_50] : memref<8x256xf32, #tpu.memory_space<vmem>>, vector<8x255xf32>
    %cst_51 = arith.constant 0.000000e+00 : f32
    %63 = vector.broadcast %cst_51 : f32 to vector<8x255xf32>
    %64 = arith.select %61, %62, %63 : vector<8x255xi1>, vector<8x255xf32>
    %65 = arith.addf %58, %64 : vector<8x255xf32>
    %c0_52 = arith.constant 0 : index
    %c1_53 = arith.constant 1 : index
    %66 = vector.load %arg3[%c0_52, %c1_53] : memref<8x256xf32, #tpu.memory_space<vmem>>, vector<8x255xf32>
    tpu.vector_store %arg3[%c0_52, %c1_53], %65 {strides = array<i32>} : memref<8x256xf32, #tpu.memory_space<vmem>>, vector<8x255xf32>,
    %c0_54 = arith.constant 0 : index
    %c0_55 = arith.constant 0 : index
    %67 = vector.load %arg3[%c0_54, %c0_55] : memref<8x256xf32, #tpu.memory_space<vmem>>, vector<8x256xf32>
    %cst_56 = arith.constant 0.0222222228 : f32
    %68 = vector.broadcast %cst_56 : f32 to vector<8x256xf32>
    %69 = arith.mulf %68, %67 : vector<8x256xf32>
    %cst_57 = arith.constant 1.000000e+00 : f32
    %70 = vector.broadcast %cst_57 : f32 to vector<8x256xf32>
    %71 = arith.addf %70, %69 : vector<8x256xf32>
    %72 = math.rsqrt %71 : vector<8x256xf32>
    %73 = math.sqrt %71 : vector<8x256xf32>
    %74 = math.rsqrt %73 : vector<8x256xf32>
    %75 = arith.mulf %72, %74 : vector<8x256xf32>
    %76 = arith.mulf %1, %75 : vector<8x256xf32>
    %c0_58 = arith.constant 0 : index
    %c0_59 = arith.constant 0 : index
    %c0_60 = arith.constant 0 : index
    %77 = vector.load %arg2[%c0_58, %c0_59, %c0_60] : memref<1x8x256xf32, #tpu.memory_space<vmem>>, vector<1x8x256xf32>
    %78 = vector.shape_cast %77 : vector<1x8x256xf32> to vector<8x256xf32>
    %79 = vector.shape_cast %76 : vector<8x256xf32> to vector<1x8x256xf32>
    tpu.vector_store %arg2[%c0_58, %c0_59, %c0_60], %79 {strides = array<i32>} : memref<1x8x256xf32, #tpu.memory_space<vmem>>, vector<1x8x256xf32>,
    return
  }
  func.func @transform_0(%arg0: i32) -> (i32, i32, i32) {
    %c0_i32 = arith.constant 0 : i32
    %c0_i32_0 = arith.constant 0 : i32
    %c0_i32_1 = arith.constant 0 : i32
    return %arg0, %c0_i32, %c0_i32_0 : i32, i32, i32
  }
  func.func @transform_1(%arg0: i32) -> (i32, i32, i32) {
    %c0_i32 = arith.constant 0 : i32
    %c0_i32_0 = arith.constant 0 : i32
    %c0_i32_1 = arith.constant 0 : i32
    return %arg0, %c0_i32, %c0_i32_0 : i32, i32, i32
  }
}

</mosaic_0001>

<bundles_post_ra>
// kernel: tpu_custom_call.1
= control target key start
LH: loop header
LB: loop body
LE: loop exit
PB: predicated region body
PF: predicated region fallthrough
CT: control target
= control target key end

     0   :  { %6 = vsyncpa [#allocation5], 0  ;;  %s776_s0 = inlined_call_operand.hbm [shape: f32[2,8,256], index: 0, kind: input, shape index: {}]   ;;  %s777_s1 = inlined_call_operand.hbm [shape: f32[2,8,256], index: 1, kind: output, shape index: {}]  }
   0x1   :  { %8 = vsyncpa [#allocation5 + $0x1], 0 }
   0x2   :  { %9 = vsyncpa [#allocation6], 0 }
   0x3   :  { %11 = vsyncpa [#allocation6 + $0x1], 0  ;;  %s601_s6 = smov 0   ;;  %s603_s7 = smov 0  }
   0x4   :  { %s605_s8 = smov 0   ;;  %s607_s9 = smov 0  }
   0x5 LB: > { %s622_s10 = sadd.s32 4294967295, %s583_s9   ;;  %s413_s11 = sadd.s32 4294967294, %s583_s9   ;;  %s583_s9 = sphi %s607_s9, %s792_s9   ;;  %s579_s8 = sphi %s605_s8, %s791_s8   ;;  %s575_s7 = sphi %s603_s7, %s790_s7   ;;  %s571_s6 = sphi %s601_s6, %s789_s6  }
   0x6   : > { %s626_s12 = sadd.s32 1, %s583_s9   ;;  %s24_s13 = sadd.s32 1, %s579_s8 }
   0x7   : > { %s21_s14 = ssub.s32 %s583_s9, %s626_s12  ;;  %p31_p0 = scmp.ne.s32.totalorder %s579_s8, %s575_s7 }
   0x8   : > { %p22_p1 = scmp.eq.s32.totalorder %s21_s14, 0  ;;  %p32_p2 = scmp.eq.s32.totalorder %s583_s9, 0 }
   0x9   : > { %p37_p3 = scmp.ne.s32.totalorder %s575_s7, %s571_s6  ;;  %p38_p4 = scmp.eq.s32.totalorder %s622_s10, 0 }
   0xa   : > { %s638_s15 = scalar_select %p22_p1, %s579_s8, %s24_s13  }
   0xb   : > { %p640_p5 = por %p32_p2, %p31_p0  ;;  %p644_p6 = por %p38_p4, %p37_p3 }
   0xc   : > { %p61_p7 = scmp.eq.s32.totalorder %s622_s10, 1  ;;  %p67_p8 = scmp.eq.s32.totalorder %s413_s11, 1 }
   0xd   : > { %p441_p10 = scmp.lt.s32.totalorder %s583_s9, 2  ;;  %s87_s20 = sand.u32 1, %s579_s8  }
   0xe   : > { %p651_p11 = por %p61_p7, %p31_p0  ;;  %p655_p12 = por %p67_p8, %p37_p3 }
   0xf   : > { %s427_s21 = sshll.u32 %s583_s9, 8  ;;  %s416_s22 = sshll.u32 %s87_s20, 4 }
  0x10   : > { %s781_s18 = scalar_select %p651_p11, 1, 0 }
  0x11   : > { %s782_s19 = scalar_select %p655_p12, 1, 0 }
  0x12   : > { %s664_s25 = scalar_lea.hbm %s776_s0, %s427_s21  ;;  %s91_s26 = scalar_lea.vmem [#allocation4], %s416_s22 }
  0x13   : > { %s99_s27 = sshll.u32 %s91_s26, 4  ;;  %p668_p13 = pnand %p441_p10, %p640_p5  ;;  %s672_s27 = int_to_ptr.vmem [resolvable:$true] %s99_s27 }
  0x14   : > { %s88_s29 = scalar_lea.sflag [#allocation5], %s87_s20  ;;  %s487_s30 = scalar_lea.hbm %s664_s25, 256 }
  0x15   : > { %p488_p2 = scmp.ne.s32.totalorder %s664_s25, %s487_s30  ;;  %p489_p3 = pneg %p668_p13 }
  0x16   : > { %s492_s4 = scalar_lea.hbm %s776_s0, 512  ;;  %p493_p5 = scmp.lt.u32.totalorder %s664_s25, %s776_s0 }
  0x17   : > { %p490_p4 = pnand %p489_p3, %p488_p2  ;;  %p494_p8 = scmp.lt.u32.totalorder %s492_s4, %s487_s30 }
  0x18   : > { %p496_p9 = scmp.lt.u32.totalorder %s487_s30, %s664_s25 }
  0x19   : > { %p491_p7 = pneg %p490_p4  ;;  %p495_p10 = por %p494_p8, %p493_p5 }
  0x1b   : > { %p497_p0 = por %p496_p9, %p495_p10 }
  0x1d   : > { %p498_p1 = pnand %p497_p0, %p491_p7 }
  0x1f   : > { %501 = shalt.err (!%p498_p1)
}
  0x20   : > { %s502_s13 = scalar_lea.vmem %s672_s27, 256  ;;  %s585_s14 = smov [#allocation4]  }
  0x21   : > { %p503_p2 = scmp.ne.s32.totalorder %s672_s27, %s502_s13  ;;  %s507_s16 = sshll.u32 %s585_s14, 4  ;;  %s508_s16 = int_to_ptr.vmem [resolvable:$false] %s507_s16 }
  0x22   : > { %s509_s20 = scalar_lea.vmem %s508_s16, 512  ;;  %p510_p11 = scmp.lt.s32.totalorder %s672_s27, %s508_s16 }
  0x23   : > { %p505_p4 = pnand %p503_p2, %p489_p3  ;;  %p511_p5 = scmp.lt.s32.totalorder %s509_s20, %s502_s13 }
  0x25   : > { %p506_p12 = pneg %p505_p4  ;;  %p512_p8 = por %p511_p5, %p510_p11 }
  0x27   : > { %p513_p9 = pnand %p512_p8, %p506_p12 }
  0x29   : > { %516 = shalt.err (!%p513_p9)
}
  0x2a   : > { %436 = dma.hbm_to_vmem [thread:$0]  (!%p668_p13), %s664_s25, 256, %s672_s27, %s88_s29  }
  0x2b   : > { %p784_p0 = scmp.lt.s32.totalorder %s583_s9, 3  ;;  %p785_p1 = scmp.ge.s32.totalorder %s583_s9, 1 }
  0x2d   : > { %p105_p3 = pnand %p785_p1, %p784_p0 }
  0x2e   : > { %s706_s21 = sand.u32 (!%p105_p3), 1, %s575_s7  }
  0x2f   : > { %108 = sbr.rel (%p105_p3) target bundleno = 416 (0x1a0), region = 24  ;;  %s420_s22 = sshll.u32 (!%p105_p3), %s706_s21, 4 }
  0x30   : > { %s111_s23 = scalar_lea.sflag (!%p105_p3), [#allocation5], %s706_s21  ;;  %s114_s24 = scalar_lea.vmem (!%p105_p3), [#allocation4], %s420_s22 }
  0x36   : > { %562 = dma.done.wait (%p644_p6), %s111_s23, 256  }
  0x37   : > { %564 = vsyncadd (%p644_p6), %s111_s23, 4294967040  ;;  %v716_v0 = vld [vmem:[%s114_s24] sm:$0xff]  ;;  %v718_v1 = vld [vmem:[%s114_s24 + $0x8] sm:$0xff]  ;;  %s586_s17 = smov 112   ;;  %s587_s25 = smov 16   ;;  %v222_v30 = vlaneseq  ;;  %vm195_vm0 = vcmask 916480  }
  0x38   : > { %v135_v2 = vmul.f32 %v716_v0, %v716_v0  ;;  %v136_v3 = vmul.f32 %v718_v1, %v718_v1  ;;  %vm219_vm1 = vcmask 1047680   ;;  %vm213_vm2 = vcmask 130048   ;;  %s588_s26 = smov 127   ;;  %s589_s27 = smov 1  }
  0x39   : > { %v223_v32 = vand.u32 127, %v222_v30  ;;  %vm267_vm7 = vcmask 1039360   ;;  %vm295_vm8 = vcmask 1047560   ;;  %vm289_vm9 = vcmask 7168   ;;  %s428_s28 = sshll.u32 %s622_s10, 8  ;;  %s132_s29 = scalar_lea.vmem [#allocation7], %s420_s22 }
  0x3a   : > { %137 = vst [vmem:[#allocation2] sm:$0xff] %v135_v2  ;;  %138 = vst [vmem:[#allocation2 + $0x8] sm:$0xff] %v136_v3  ;;  %v143_v4 = vrot.slane %v135_v2, 1  ;;  %v144_v5 = vrot.slane %v136_v3, 1  ;;  %v153_v10 = vrot.slane %v135_v2, 7  ;;  %v154_v11 = vrot.slane %v136_v3, 7  ;;  %s732_s4 = scalar_lea.hbm %s777_s1, %s428_s28 }
  0x3b   : > { %v163_v16 = vrot.slane %v135_v2, 2  ;;  %v164_v17 = vrot.slane %v136_v3, 2  ;;  %v173_v22 = vrot.slane %v135_v2, 6  ;;  %v174_v23 = vrot.slane %v136_v3, 6  ;;  %s343_s30 = sshll.u32 %s132_s29, 4  ;;  %s329_s5 = scalar_lea.sflag [#allocation6], %s706_s21  ;;  %s734_s30 = int_to_ptr.vmem [resolvable:$true] %s343_s30 }
  0x3c   : > { %v224_v38 = vadd.s32 128, %v223_v32  ;;  %v229_v42 = vand.u32 15, %v223_v32  ;;  %s517_s10 = scalar_lea.vmem %s734_s30, 256  ;;  %p786_p11 = scmp.ne.s32.totalorder %s781_s18, 0 }
  0x3d   : > { %p518_p6 = scmp.ne.s32.totalorder %s734_s30, %s517_s10  ;;  %s590_s11 = smov [#allocation7]  }
  0x3e   : > { %v236_v40 = vand.u32 15, %v224_v38  ;;  %vm255_vm4 = vcmp.ge.s32.totalorder %v229_v42, 1  ;;  %vm277_vm6 = vcmp.lt.s32.totalorder %v229_v42, 15  ;;  %s521_s13 = sshll.u32 %s590_s11, 4  ;;  %s522_s13 = int_to_ptr.vmem [resolvable:$false] %s521_s13 }
  0x3f   : > { %p519_p12 = pnand %p518_p6, %p786_p11  ;;  %s523_s14 = scalar_lea.vmem %s522_s13, 512 }
  0x40   : > { %vm256_vm3 = vcmp.ge.s32.totalorder %v236_v40, 1  ;;  %vm278_vm5 = vcmp.lt.s32.totalorder %v236_v40, 15  ;;  %p524_p7 = scmp.lt.s32.totalorder %s734_s30, %s522_s13  ;;  %p525_p10 = scmp.lt.s32.totalorder %s523_s14, %s517_s10 }
  0x41   : > { %v139_v6 = vld [vmem:[#allocation2] sm:$0x7f]  ;;  %v140_v7 = vld [vmem:[#allocation2 + $0x8] sm:$0x7f]  ;;  %p520_p13 = pneg %p519_p12 }
  0x42   : > { %v147_v8 = vadd.f32 %v143_v4, %v139_v6  ;;  %v148_v9 = vadd.f32 %v144_v5, %v140_v7  ;;  %p526_p2 = por %p525_p10, %p524_p7 }
  0x44   : > { %149 = vst [vmem:[#allocation2] sm:$0x7f] %v147_v8  ;;  %150 = vst [vmem:[#allocation2 + $0x8] sm:$0x7f] %v148_v9  ;;  %p527_p4 = pnand %p526_p2, %p520_p13 }
  0x4b   : > { %v151_v12 = vld [vmem:[#allocation2] sm:$0xfe]  ;;  %v152_v13 = vld [vmem:[#allocation2 + $0x8] sm:$0xfe] }
  0x4c   : > { %v157_v14 = vadd.f32 %v153_v10, %v151_v12  ;;  %v158_v15 = vadd.f32 %v154_v11, %v152_v13 }
  0x4e   : > { %159 = vst [vmem:[#allocation2] sm:$0xfe] %v157_v14  ;;  %160 = vst [vmem:[#allocation2 + $0x8] sm:$0xfe] %v158_v15 }
  0x55   : > { %v161_v18 = vld [vmem:[#allocation2] sm:$0x3f]  ;;  %v162_v19 = vld [vmem:[#allocation2 + $0x8] sm:$0x3f] }
  0x56   : > { %v167_v20 = vadd.f32 %v163_v16, %v161_v18  ;;  %v168_v21 = vadd.f32 %v164_v17, %v162_v19 }
  0x58   : > { %169 = vst [vmem:[#allocation2] sm:$0x3f] %v167_v20  ;;  %170 = vst [vmem:[#allocation2 + $0x8] sm:$0x3f] %v168_v21 }
  0x5f   : > { %v171_v24 = vld [vmem:[#allocation2] sm:$0xfc]  ;;  %v172_v25 = vld [vmem:[#allocation2 + $0x8] sm:$0xfc] }
  0x60   : > { %v177_v26 = vadd.f32 %v173_v22, %v171_v24  ;;  %v178_v27 = vadd.f32 %v174_v23, %v172_v25 }
  0x62   : > { %179 = vst [vmem:[#allocation2] sm:$0xfc] %v177_v26  ;;  %180 = vst [vmem:[#allocation2 + $0x8] sm:$0xfc] %v178_v27 }
  0x69   : > { %v187_v28 = vld [vmem:[#allocation2] sm:$0xff]  ;;  %v188_v29 = vld [vmem:[#allocation2 + $0x8] sm:$0xff] }
  0x6a   : > { %191 = vrot.lane.b32.xlu0 %v187_v28, %s586_s17  ;;  %209 = vrot.lane.b32.xlu1 %v187_v28, %s587_s25  ;;  %184 = vst [vmem:[#allocation3 + $0x8] sm:$0xff] %v188_v29 }
  0x6e   : > { %193 = vrot.lane.b32.xlu0 %v188_v29, %s586_s17  ;;  %211 = vrot.lane.b32.xlu1 %v188_v29, %s587_s25 }
  0xdc   : > { %v192_v31 = vpop.permute.xlu0 %191  ;;  %v210_v36 = vpop.permute.xlu1 %209 }
  0xe0   : > { %v194_v33 = vpop.permute.xlu0 %193  ;;  %v212_v41 = vpop.permute.xlu1 %211 }
  0xe1   : > { %v196_v34 = vsel %vm195_vm0, %v192_v31, %v194_v33  ;;  %v200_v35 = vadd.f32 %v194_v33, %v188_v29  ;;  %v214_v44 = vsel %vm213_vm2, %v210_v36, %v212_v41 }
  0xe2   : > { %v199_v37 = vadd.f32 %v196_v34, %v187_v28 }
  0xe3   : > { %202 = vst.msk [vmem:[#allocation3 + $0x8] sm:$0xff] %vm195_vm0, %v200_v35 }
  0xe4   : > { %201 = vst [vmem:[#allocation3] sm:$0xff] %v199_v37  ;;  %v217_v39 = vadd.f32 %v210_v36, %v199_v37 }
  0xe6   : > { %220 = vst.msk [vmem:[#allocation3] sm:$0xff] %vm219_vm1, %v217_v39 }
  0xea   : > { %v204_v43 = vld [vmem:[#allocation3 + $0x8] sm:$0xff] }
  0xeb   : > { %v218_v45 = vadd.f32 %v214_v44, %v204_v43 }
  0xed   : > { %v249_v46 = vld [vmem:[#allocation3] sm:$0xff]  ;;  %221 = vst [vmem:[#allocation3 + $0x8] sm:$0xff] %v218_v45  ;;  %252 = vst [vmem:[#allocation2 + $0x8] sm:$0xff] %v218_v45  ;;  %v260_v47 = vsel %vm256_vm3, %v218_v45, 0.0  ;;  %v282_v49 = vsel %vm278_vm5, %v218_v45, 0.0 }
  0xee   : > { %265 = vrot.lane.b32.xlu1 %v260_v47, %s588_s26  ;;  %v259_v48 = vsel %vm255_vm4, %v249_v46, 0.0  ;;  %v281_v50 = vsel %vm277_vm6, %v249_v46, 0.0 }
  0xef   : > { %263 = vrot.lane.b32.xlu0 %v259_v48, %s588_s26 }
  0xf2   : > { %287 = vrot.lane.b32.xlu1 %v282_v49, %s589_s27 }
  0xf3   : > { %285 = vrot.lane.b32.xlu0 %v281_v50, %s589_s27 }
 0x160   : > { %v266_v51 = vpop.permute.xlu1 %265 }
 0x161   : > { %v272_v52 = vadd.f32 %v266_v51, %v218_v45  ;;  %v264_v53 = vpop.permute.xlu0 %263 }
 0x162   : > { %v268_v54 = vsel %vm267_vm7, %v264_v53, %v266_v51 }
 0x163   : > { %274 = vst.msk [vmem:[#allocation2 + $0x8] sm:$0xff] %vm267_vm7, %v272_v52  ;;  %v271_v55 = vadd.f32 %v268_v54, %v249_v46 }
 0x164   : > { %v288_v58 = vpop.permute.xlu1 %287 }
 0x165   : > { %273 = vst [vmem:[#allocation2] sm:$0xff] %v271_v55  ;;  %v286_v56 = vpop.permute.xlu0 %285 }
 0x166   : > { %v293_v57 = vadd.f32 %v286_v56, %v271_v55  ;;  %v290_v60 = vsel %vm289_vm9, %v286_v56, %v288_v58 }
 0x168   : > { %296 = vst.msk [vmem:[#allocation2] sm:$0xff] %vm295_vm8, %v293_v57 }
 0x16a   : > { %v276_v59 = vld [vmem:[#allocation2 + $0x8] sm:$0xff] }
 0x16b   : > { %v294_v61 = vadd.f32 %v290_v60, %v276_v59 }
 0x16d   : > { %297 = vst [vmem:[#allocation2 + $0x8] sm:$0xff] %v294_v61  ;;  %v301_v62 = vmul.f32 0.022222223, %v294_v61 }
 0x16f   : > { %v298_v63 = vld [vmem:[#allocation2] sm:$0xff]  ;;  %v303_v2 = vadd.f32 1.0, %v301_v62 }
 0x170   : > { %v300_v3 = vmul.f32 0.022222223, %v298_v63 }
 0x171   : > { %479 = vrsqrt.f32 %v303_v2  ;;  %vm315_vm10 = vcmp.eq.f32.partialorder %v303_v2, inf  ;;  %v318_v7 = vand.u32 2147483648, %v303_v2  ;;  %vm317_vm11 = vcmp.eq.f32.partialorder %v303_v2, 0.0 }
 0x172   : > { %v302_v4 = vadd.f32 1.0, %v300_v3 }
 0x174   : > { %481 = vrsqrt.f32 %v302_v4  ;;  %vm308_vm12 = vcmp.eq.f32.partialorder %v302_v4, inf  ;;  %v311_v12 = vand.u32 2147483648, %v302_v4  ;;  %vm310_vm13 = vcmp.eq.f32.partialorder %v302_v4, 0.0 }
 0x17b   : > { %v480_v5 = vpop.eup %479 }
 0x17c   : > { %v314_v6 = vmul.f32 %v480_v5, %v303_v2 }
 0x17e   : > { %v482_v8 = vpop.eup %481  ;;  %v316_v9 = vsel %vm315_vm10, %v303_v2, %v314_v6 }
 0x17f   : > { %v307_v10 = vmul.f32 %v482_v8, %v302_v4  ;;  %v319_v11 = vsel %vm317_vm11, %v318_v7, %v316_v9 }
 0x180   : > { %483 = vrsqrt.f32 %v319_v11 }
 0x181   : > { %v309_v13 = vsel %vm308_vm12, %v302_v4, %v307_v10 }
 0x182   : > { %v312_v14 = vsel %vm310_vm13, %v311_v12, %v309_v13 }
 0x183   : > { %485 = vrsqrt.f32 %v312_v14 }
 0x18a   : > { %v484_v15 = vpop.eup %483 }
 0x18b   : > { %v323_v16 = vmul.f32 %v484_v15, %v480_v5 }
 0x18d   : > { %v486_v17 = vpop.eup %485  ;;  %v325_v18 = vmul.f32 %v323_v16, %v718_v1 }
 0x18e   : > { %v322_v19 = vmul.f32 %v486_v17, %v482_v8 }
 0x18f   : > { %327 = vst [vmem:[%s132_s29 + $0x8] sm:$0xff] %v325_v18 }
 0x190   : > { %v324_v20 = vmul.f32 %v322_v19, %v716_v0 }
 0x192   : > { %326 = vst [vmem:[%s132_s29] sm:$0xff] %v324_v20 }
 0x193   : > { %530 = shalt.err (!%p527_p4)
}
 0x194   : > { %s531_s16 = scalar_lea.hbm %s732_s4, 256  ;;  %s535_s22 = scalar_lea.hbm %s777_s1, 512 }
 0x195   : > { %p532_p5 = scmp.ne.s32.totalorder %s732_s4, %s531_s16  ;;  %p536_p0 = scmp.lt.u32.totalorder %s732_s4, %s777_s1 }
 0x196   : > { %p537_p1 = scmp.lt.u32.totalorder %s535_s22, %s531_s16  ;;  %p539_p6 = scmp.lt.u32.totalorder %s531_s16, %s732_s4 }
 0x197   : > { %p533_p8 = pnand %p532_p5, %p786_p11 }
 0x198   : > { %p538_p3 = por %p537_p1, %p536_p0 }
 0x199   : > { %p534_p9 = pneg %p533_p8 }
 0x19a   : > { %p540_p12 = por %p539_p6, %p538_p3 }
 0x19c   : > { %p541_p13 = pnand %p540_p12, %p534_p9 }
 0x19e   : > { %544 = shalt.err (!%p541_p13)
}
 0x19f   : > { %431 = dma.vmem_to_hbm [thread:$0]  (%p786_p11), %s734_s30, 256, %s732_s4, %s329_s5  }
 0x1a0 PF: > { %s355_s17 = sand.u32 1, %s571_s6   ;;  %p787_p7 = scmp.ne.s32.totalorder %s782_s19, 0 }
 0x1a1   : > { %p788_p10 = scmp.ge.s32.totalorder %s583_s9, 2  ;;  %s356_s25 = scalar_lea.sflag [#allocation6], %s355_s17 }
 0x1a3   : > { %p438_p2 = pnand %p788_p10, %p787_p7 }
 0x1a5   : > { %566 = dma.done.wait (!%p438_p2), %s356_s25, 256  }
 0x1a6   : > { %568 = vsyncadd (!%p438_p2), %s356_s25, 4294967040  ;;  %p14_p4 = scmp.ge.s32.totalorder %s626_s12, 4   ;;  %s789_s6 = smov %s575_s7 }
 0x1a7   : > { %s790_s7 = smov %s579_s8  ;;  %s791_s8 = smov %s638_s15 }
 0x1a8   : > { %s792_s9 = smov %s626_s12  ;;  %16 = sbr.rel (!%p14_p4) target bundleno = 5 (0x5), region = 69 }
 0x1af   :  { %361 = vsyncpa [#allocation5], 1 }
 0x1b0   :  { %363 = vsyncpa [#allocation5 + $0x1], 1 }
 0x1b1   :  { %364 = vsyncpa [#allocation6], 1 }
 0x1b2   :  { %366 = vsyncpa [#allocation6 + $0x1], 1 }

</bundles_post_ra>
